<compile_context>
chip_gen: v7x
topology: tpu7x:2x2x1
jax: 0.10.0
libtpu: 0.0.40
codegen_flags: <defaults>
</compile_context>

<pallas_src>
import jax
import jax.numpy as jnp
from jax.experimental import pallas as pl
from jax.experimental.pallas import tpu as pltpu

EPS = 1e-5          # nn.BatchNorm2d default
LANE = 128          # lane width: pad Cout to a multiple of this (lane-dense stores)
VMEM_LIMIT = 32 * 1024 * 1024   # safe on v5e/v6e (128 MiB) and v7x (64 MiB physical)


def _round_up(x, m):
    return ((x + m - 1) // m) * m


def _pick_tk(k, cap=512):
    """K tile: full K when small, else a 128-multiple divisor (keeps lane layout legal)."""
    if k <= cap:
        return k
    for t in range(cap - cap % 128, 0, -128):
        if k % t == 0:
            return t
    return k


def _pad2d(x, rows, cols):
    return jnp.pad(x, ((0, rows - x.shape[0]), (0, cols - x.shape[1])))


# ----------------------------- Pallas kernels ------------------------------

def _matmul_stats_kernel(a_ref, b_ref, o_ref, sum_ref, ssq_ref, acc_ref):
    """Tiled matmul with f32 accumulator; on the last K step also emits the
    per-(M-tile, channel) partial sum and sum-of-squares used for BatchNorm."""
    k = pl.program_id(2)

    @pl.when(k == 0)
    def _init():
        acc_ref[...] = jnp.zeros_like(acc_ref)

    acc_ref[...] += jnp.dot(a_ref[...], b_ref[...],
                            preferred_element_type=jnp.float32)

    @pl.when(k == pl.num_programs(2) - 1)
    def _finalize():
        acc = acc_ref[...]
        o_ref[...] = acc.astype(o_ref.dtype)
        sum_ref[0] = jnp.sum(acc, axis=0, keepdims=True)
        ssq_ref[0] = jnp.sum(acc * acc, axis=0, keepdims=True)


def _bn_relu_kernel(x_ref, sc_ref, sh_ref, o_ref):
    # relu(scale * x + shift)   -- scale/shift precomputed from batch statistics
    o_ref[...] = jnp.maximum(x_ref[...] * sc_ref[...] + sh_ref[...], 0.0)


def _bn_add_bn_relu_kernel(x_ref, r_ref, sx_ref, bx_ref, sr_ref, br_ref, o_ref):
    # relu( bn2(conv2) + shortcut )  with shortcut = sr * r + br
    # (identity shortcut: sr = 1, br = 0; projection shortcut: its BN scale/shift)
    y = x_ref[...] * sx_ref[...] + bx_ref[...]
    y = y + r_ref[...] * sr_ref[...] + br_ref[...]
    o_ref[...] = jnp.maximum(y, 0.0)


# --------------------------- pallas_call wrappers ---------------------------

def matmul_with_stats(a, b, *, tm, tn):
    """a: [Mpad, K] (bf16), b: [K, Npad] (bf16)  ->  (out f32 [Mpad, Npad],
    per-M-tile channel sums [gm, 1, Npad], sums of squares [gm, 1, Npad])."""
    m_pad, k_dim = a.shape
    k_dim2, n_pad = b.shape
    assert k_dim == k_dim2 and m_pad % tm == 0 and n_pad % tn == 0
    tk = _pick_tk(k_dim)
    gm, gn, gk = m_pad // tm, n_pad // tn, k_dim // tk

    return pl.pallas_call(
        _matmul_stats_kernel,
        out_shape=(
            jax.ShapeDtypeStruct((m_pad, n_pad), jnp.float32),
            jax.ShapeDtypeStruct((gm, 1, n_pad), jnp.float32),
            jax.ShapeDtypeStruct((gm, 1, n_pad), jnp.float32),
        ),
        grid=(gm, gn, gk),
        in_specs=[
            pl.BlockSpec((tm, tk), lambda i, j, k: (i, k)),
            pl.BlockSpec((tk, tn), lambda i, j, k: (k, j)),
        ],
        out_specs=(
            pl.BlockSpec((tm, tn), lambda i, j, k: (i, j)),
            pl.BlockSpec((1, 1, tn), lambda i, j, k: (i, 0, j)),
            pl.BlockSpec((1, 1, tn), lambda i, j, k: (i, 0, j)),
        ),
        scratch_shapes=[pltpu.VMEM((tm, tn), jnp.float32)],
        compiler_params=pltpu.CompilerParams(
            dimension_semantics=("parallel", "parallel", "arbitrary"),
            vmem_limit_bytes=VMEM_LIMIT,
        ),
    )(a, b)


def apply_bn_relu(x, scale, shift, *, tm, tn):
    m_pad, n_pad = x.shape
    gm, gn = m_pad // tm, n_pad // tn
    return pl.pallas_call(
        _bn_relu_kernel,
        out_shape=jax.ShapeDtypeStruct((m_pad, n_pad), jnp.float32),
        grid=(gm, gn),
        in_specs=[
            pl.BlockSpec((tm, tn), lambda i, j: (i, j)),
            pl.BlockSpec((1, tn), lambda i, j: (0, j)),
            pl.BlockSpec((1, tn), lambda i, j: (0, j)),
        ],
        out_specs=pl.BlockSpec((tm, tn), lambda i, j: (i, j)),
        compiler_params=pltpu.CompilerParams(
            dimension_semantics=("parallel", "parallel"),
            vmem_limit_bytes=VMEM_LIMIT,
        ),
    )(x, scale, shift)


def apply_bn_add_bn_relu(x, res, sx, bx, sr, br, *, tm, tn):
    m_pad, n_pad = x.shape
    gm, gn = m_pad // tm, n_pad // tn
    return pl.pallas_call(
        _bn_add_bn_relu_kernel,
        out_shape=jax.ShapeDtypeStruct((m_pad, n_pad), jnp.float32),
        grid=(gm, gn),
        in_specs=[
            pl.BlockSpec((tm, tn), lambda i, j: (i, j)),
            pl.BlockSpec((tm, tn), lambda i, j: (i, j)),
            pl.BlockSpec((1, tn), lambda i, j: (0, j)),
            pl.BlockSpec((1, tn), lambda i, j: (0, j)),
            pl.BlockSpec((1, tn), lambda i, j: (0, j)),
            pl.BlockSpec((1, tn), lambda i, j: (0, j)),
        ],
        out_specs=pl.BlockSpec((tm, tn), lambda i, j: (i, j)),
        compiler_params=pltpu.CompilerParams(
            dimension_semantics=("parallel", "parallel"),
            vmem_limit_bytes=VMEM_LIMIT,
        ),
    )(x, res, sx, bx, sr, br)


# ------------------------------- glue (JAX) ---------------------------------

def extract_patches_3x3(x_nhwc, stride):
    """im2col for a 3x3 conv with padding=1.  Returns ([M, 9*C], (N, Ho, Wo))."""
    N, H, W, C = x_nhwc.shape
    xp = jnp.pad(x_nhwc, ((0, 0), (1, 1), (1, 1), (0, 0)))
    Ho = (H - 1) // stride + 1
    Wo = (W - 1) // stride + 1
    slabs = []
    for dy in range(3):
        for dx in range(3):
            sl = xp[:, dy:dy + (Ho - 1) * stride + 1:stride,
                       dx:dx + (Wo - 1) * stride + 1:stride, :]
            slabs.append(sl)
    patches = jnp.concatenate(slabs, axis=-1)           # [N, Ho, Wo, 9*C]
    return patches.reshape(N * Ho * Wo, 9 * C), (N, Ho, Wo)


def bn_scale_shift(sums, ssqs, gamma, beta, m_real, n_real, n_pad):
    """Combine the per-M-tile partial stats into exact batch statistics and
    fold gamma/beta into a single scale/shift pair (O(C) plain-JAX work)."""
    mean = jnp.sum(sums, axis=0) / m_real                      # (1, n_pad)
    # E[x^2] - mean^2; clamp at 0 to guard the cancellation case.  (Padded
    # rows contribute exact zeros, so dividing by the real M is exact.)
    var = jnp.maximum(jnp.sum(ssqs, axis=0) / m_real - mean * mean, 0.0)
    g = jnp.pad(gamma, ((0, 0), (0, n_pad - n_real)))
    b = jnp.pad(beta, ((0, 0), (0, n_pad - n_real)))
    scale = g * jax.lax.rsqrt(var + EPS)
    shift = b - mean * scale
    return scale, shift


def init_params(key, in_planes, planes, stride):
    ks = jax.random.split(key, 10)
    p = {
        # conv weights in HWIO; reshaped to [9*Cin, Cout] for the matmul kernel.
        "w1": jax.random.normal(ks[0], (3, 3, in_planes, planes), jnp.float32) * 0.2,
        "g1": 1.0 + 0.1 * jax.random.normal(ks[1], (1, planes), jnp.float32),
        "b1": 0.1 * jax.random.normal(ks[2], (1, planes), jnp.float32),
        "w2": jax.random.normal(ks[3], (3, 3, planes, planes), jnp.float32) * 0.2,
        "g2": 1.0 + 0.1 * jax.random.normal(ks[4], (1, planes), jnp.float32),
        "b2": 0.1 * jax.random.normal(ks[5], (1, planes), jnp.float32),
    }
    if stride != 1 or in_planes != planes:
        p["wsc"] = jax.random.normal(ks[6], (in_planes, planes), jnp.float32) * 0.2
        p["gsc"] = 1.0 + 0.1 * jax.random.normal(ks[7], (1, planes), jnp.float32),
        p["gsc"] = p["gsc"][0]
        p["bsc"] = 0.1 * jax.random.normal(ks[8], (1, planes), jnp.float32)
    return p


def basic_block_gpm_forward(x_nchw, params, in_planes, planes, stride):
    x = jnp.transpose(x_nchw, (0, 2, 3, 1)).astype(jnp.float32)   # -> NHWC
    N, H, W, _ = x.shape
    n_pad = _round_up(planes, LANE)                               # lane-dense Cout
    tn = 256 if n_pad % 256 == 0 else 128                         # MXU-friendly N tile

    # ---- conv1 (3x3, stride) -> bn1 -> relu --------------------------------
    patches1, (_, Ho, Wo) = extract_patches_3x3(x, stride)
    M = N * Ho * Wo
    tm = min(256, _round_up(M, 8))
    m_pad = _round_up(M, tm)

    a1 = _pad2d(patches1, m_pad, patches1.shape[1]).astype(jnp.bfloat16)
    w1 = _pad2d(params["w1"].reshape(9 * in_planes, planes), 9 * in_planes,
                n_pad).astype(jnp.bfloat16)
    c1, s1, q1 = matmul_with_stats(a1, w1, tm=tm, tn=tn)
    sc1, sh1 = bn_scale_shift(s1, q1, params["g1"], params["b1"], M, planes, n_pad)
    h1 = apply_bn_relu(c1, sc1, sh1, tm=tm, tn=tn)                # [m_pad, n_pad]

    # ---- conv2 (3x3, stride 1) -> bn2 --------------------------------------
    h1_nhwc = h1[:M, :planes].reshape(N, Ho, Wo, planes)
    patches2, _ = extract_patches_3x3(h1_nhwc, 1)
    a2 = _pad2d(patches2, m_pad, patches2.shape[1]).astype(jnp.bfloat16)
    w2 = _pad2d(params["w2"].reshape(9 * planes, planes), 9 * planes,
                n_pad).astype(jnp.bfloat16)
    c2, s2, q2 = matmul_with_stats(a2, w2, tm=tm, tn=tn)
    sc2, sh2 = bn_scale_shift(s2, q2, params["g2"], params["b2"], M, planes, n_pad)

    # ---- shortcut -----------------------------------------------------------
    if stride != 1 or in_planes != planes:
        # 1x1 conv with stride == strided subsample + matmul (reuses the fused
        # stats matmul); its BN is folded into the final epilogue.
        xs = x[:, ::stride, ::stride, :].reshape(M, in_planes)
        asc = _pad2d(xs, m_pad, in_planes).astype(jnp.bfloat16)
        wsc = _pad2d(params["wsc"], in_planes, n_pad).astype(jnp.bfloat16)
        res, ssc, qsc = matmul_with_stats(asc, wsc, tm=tm, tn=tn)
        scr, shr = bn_scale_shift(ssc, qsc, params["gsc"], params["bsc"],
                                  M, planes, n_pad)
    else:
        res = _pad2d(x.reshape(M, in_planes), m_pad, n_pad)       # identity
        scr = jnp.ones((1, n_pad), jnp.float32)
        shr = jnp.zeros((1, n_pad), jnp.float32)

    # ---- out = relu( bn2(conv2) + shortcut ) --------------------------------
    out = apply_bn_add_bn_relu(c2, res, sc2, sh2, scr, shr, tm=tm, tn=tn)
    out = out[:M, :planes].reshape(N, Ho, Wo, planes)
    return jnp.transpose(out, (0, 3, 1, 2))                       # -> NCHW


# ------------------------------ pure-JAX reference --------------------------

def _ref_bn(y, g, b):
    mean = jnp.mean(y, axis=(0, 1, 2), keepdims=True)
    var = jnp.mean(y * y, axis=(0, 1, 2), keepdims=True) - mean * mean
    return (y - mean) * jax.lax.rsqrt(var + EPS) * g.reshape(1, 1, 1, -1) \
        + b.reshape(1, 1, 1, -1)


def ref_forward(x_nchw, params, in_planes, planes, stride):
    x = jnp.transpose(x_nchw, (0, 2, 3, 1)).astype(jnp.float32)

    def conv(v, w, s, pad):
        # Match the kernel's MXU numerics: bf16 operands, f32 accumulation.
        return jax.lax.conv_general_dilated(
            v.astype(jnp.bfloat16), w.astype(jnp.bfloat16), (s, s), pad,
            dimension_numbers=("NHWC", "HWIO", "NHWC"),
            preferred_element_type=jnp.float32)

    out = jnp.maximum(_ref_bn(conv(x, params["w1"], stride, [(1, 1), (1, 1)]),
                              params["g1"], params["b1"]), 0.0)
    out = _ref_bn(conv(out, params["w2"], 1, [(1, 1), (1, 1)]),
                  params["g2"], params["b2"])
    if stride != 1 or in_planes != planes:
        sc = conv(x, params["wsc"].reshape(1, 1, in_planes, planes), stride,
                  [(0, 0), (0, 0)])
        sc = _ref_bn(sc, params["gsc"], params["bsc"])
    else:
        sc = x
    return jnp.transpose(jnp.maximum(out + sc, 0.0), (0, 3, 1, 2))


# ----------------------------------- main ------------------------------------

if __name__ == "__main__":
    key = jax.random.PRNGKey(0)
    k1, k2, k3, k4 = jax.random.split(key, 4)

    # Case 1: downsampling block (stride 2, channel expansion) -> projection shortcut.
    in_planes, planes, stride = 4, 8, 2
    x = jax.random.normal(k1, (2, in_planes, 16, 16), jnp.float32)   # NCHW (PyTorch layout)
    params = init_params(k2, in_planes, planes, stride)
    out = jax.block_until_ready(basic_block_gpm_forward(x, params, in_planes, planes, stride))
    ref = jax.block_until_ready(ref_forward(x, params, in_planes, planes, stride))
    assert out.shape == (2, planes, 8, 8), out.shape
    err = float(jnp.max(jnp.abs(out - ref)))
    assert err < 2e-2, err   # bf16 MXU operands, f32 accumulation

    # Case 2: identity-shortcut block; also exercises multi-M-tile BN reduction (gm > 1).
    in_planes2, planes2, stride2 = 8, 8, 1
    x2 = jax.random.normal(k3, (2, in_planes2, 16, 16), jnp.float32)
    params2 = init_params(k4, in_planes2, planes2, stride2)
    out2 = jax.block_until_ready(basic_block_gpm_forward(x2, params2, in_planes2, planes2, stride2))
    ref2 = jax.block_until_ready(ref_forward(x2, params2, in_planes2, planes2, stride2))
    assert out2.shape == (2, planes2, 16, 16), out2.shape
    err2 = float(jnp.max(jnp.abs(out2 - ref2)))
    assert err2 < 2e-2, err2

    print("KERNEL_OK")
</pallas_src>

<mosaic_0001>
module attributes {stable_mosaic.version = 11 : i64} {
  func.func @_matmul_stats_kernel(%arg0: i32, %arg1: i32, %arg2: i32, %arg3: memref<128x36xbf16, #tpu.memory_space<vmem>>, %arg4: memref<36x128xbf16, #tpu.memory_space<vmem>>, %arg5: memref<128x128xf32, #tpu.memory_space<vmem>>, %arg6: memref<1x1x128xf32, #tpu.memory_space<vmem>>, %arg7: memref<1x1x128xf32, #tpu.memory_space<vmem>>, %arg8: memref<128x128xf32, #tpu.memory_space<vmem>>) attributes {dimension_semantics = [#tpu.dimension_semantics<parallel>, #tpu.dimension_semantics<parallel>, #tpu.dimension_semantics<arbitrary>], iteration_bounds = array<i64: 1, 1, 1>, scalar_prefetch = 0 : i64, scratch_operands = 1 : i64, tpu.core_type = #tpu.core_type<tc>, window_params = [{transform_indices = @transform_0, window_bounds = array<i64: 128, 36>}, {transform_indices = @transform_1, window_bounds = array<i64: 36, 128>}, {transform_indices = @transform_2, window_bounds = array<i64: 128, 128>}, {transform_indices = @transform_3, window_bounds = array<i64: 1, 1, 128>}, {transform_indices = @transform_4, window_bounds = array<i64: 1, 1, 128>}]} {
    %c0_i32 = arith.constant 0 : i32
    %0 = arith.cmpi eq, %arg2, %c0_i32 : i32
    %1 = arith.extui %0 : i1 to i32
    %c0_i32_0 = arith.constant 0 : i32
    %2 = arith.cmpi ne, %1, %c0_i32_0 : i32
    scf.if %2 {
      %cst_10 = arith.constant 0.000000e+00 : f32
      %12 = vector.broadcast %cst_10 : f32 to vector<128x128xf32>
      %c0_11 = arith.constant 0 : index
      %c0_12 = arith.constant 0 : index
      %13 = vector.load %arg8[%c0_11, %c0_12] : memref<128x128xf32, #tpu.memory_space<vmem>>, vector<128x128xf32>
      tpu.vector_store %arg8[%c0_11, %c0_12], %12 {strides = array<i32>} : memref<128x128xf32, #tpu.memory_space<vmem>>, vector<128x128xf32>,
    } else {
    }
    %c0 = arith.constant 0 : index
    %c0_1 = arith.constant 0 : index
    %3 = vector.load %arg8[%c0, %c0_1] : memref<128x128xf32, #tpu.memory_space<vmem>>, vector<128x128xf32>
    %c0_2 = arith.constant 0 : index
    %c0_3 = arith.constant 0 : index
    %4 = vector.load %arg3[%c0_2, %c0_3] : memref<128x36xbf16, #tpu.memory_space<vmem>>, vector<128x36xbf16>
    %c0_4 = arith.constant 0 : index
    %c0_5 = arith.constant 0 : index
    %5 = vector.load %arg4[%c0_4, %c0_5] : memref<36x128xbf16, #tpu.memory_space<vmem>>, vector<36x128xbf16>
    %cst = arith.constant dense<0.000000e+00> : vector<128x128xf32>
    %6 = tpu.matmul %4, %5, %cst {dimension_numbers = #tpu.dot_dimension_numbers<[1], [0], [0], [1], [0, 0, 1, 1], [], []>} : vector<128x36xbf16>, vector<36x128xbf16>, vector<128x128xf32> -> vector<128x128xf32>
    %7 = arith.addf %3, %6 : vector<128x128xf32>
    %c0_6 = arith.constant 0 : index
    %c0_7 = arith.constant 0 : index
    %8 = vector.load %arg8[%c0_6, %c0_7] : memref<128x128xf32, #tpu.memory_space<vmem>>, vector<128x128xf32>
    tpu.vector_store %arg8[%c0_6, %c0_7], %7 {strides = array<i32>} : memref<128x128xf32, #tpu.memory_space<vmem>>, vector<128x128xf32>,
    %c0_i32_8 = arith.constant 0 : i32
    %9 = arith.cmpi eq, %arg2, %c0_i32_8 : i32
    %10 = arith.extui %9 : i1 to i32
    %c0_i32_9 = arith.constant 0 : i32
    %11 = arith.cmpi ne, %10, %c0_i32_9 : i32
    scf.if %11 {
      %c0_10 = arith.constant 0 : index
      %c0_11 = arith.constant 0 : index
      %12 = vector.load %arg8[%c0_10, %c0_11] : memref<128x128xf32, #tpu.memory_space<vmem>>, vector<128x128xf32>
      %c0_12 = arith.constant 0 : index
      %c0_13 = arith.constant 0 : index
      %13 = vector.load %arg5[%c0_12, %c0_13] : memref<128x128xf32, #tpu.memory_space<vmem>>, vector<128x128xf32>
      tpu.vector_store %arg5[%c0_12, %c0_13], %12 {strides = array<i32>} : memref<128x128xf32, #tpu.memory_space<vmem>>, vector<128x128xf32>,
      %cst_14 = arith.constant dense<0.000000e+00> : vector<128xf32>
      %14 = vector.multi_reduction <add>, %12, %cst_14 [0] : vector<128x128xf32> to vector<128xf32>
      %15 = vector.shape_cast %14 : vector<128xf32> to vector<1x128xf32>
      %c0_15 = arith.constant 0 : index
      %c0_16 = arith.constant 0 : index
      %c0_17 = arith.constant 0 : index
      %16 = vector.load %arg6[%c0_15, %c0_16, %c0_17] : memref<1x1x128xf32, #tpu.memory_space<vmem>>, vector<1x1x128xf32>
      %17 = vector.shape_cast %16 : vector<1x1x128xf32> to vector<1x128xf32>
      %18 = vector.shape_cast %15 : vector<1x128xf32> to vector<1x1x128xf32>
      tpu.vector_store %arg6[%c0_15, %c0_16, %c0_17], %18 {strides = array<i32>} : memref<1x1x128xf32, #tpu.memory_space<vmem>>, vector<1x1x128xf32>,
      %19 = arith.mulf %12, %12 : vector<128x128xf32>
      %cst_18 = arith.constant dense<0.000000e+00> : vector<128xf32>
      %20 = vector.multi_reduction <add>, %19, %cst_18 [0] : vector<128x128xf32> to vector<128xf32>
      %21 = vector.shape_cast %20 : vector<128xf32> to vector<1x128xf32>
      %c0_19 = arith.constant 0 : index
      %c0_20 = arith.constant 0 : index
      %c0_21 = arith.constant 0 : index
      %22 = vector.load %arg7[%c0_19, %c0_20, %c0_21] : memref<1x1x128xf32, #tpu.memory_space<vmem>>, vector<1x1x128xf32>
      %23 = vector.shape_cast %22 : vector<1x1x128xf32> to vector<1x128xf32>
      %24 = vector.shape_cast %21 : vector<1x128xf32> to vector<1x1x128xf32>
      tpu.vector_store %arg7[%c0_19, %c0_20, %c0_21], %24 {strides = array<i32>} : memref<1x1x128xf32, #tpu.memory_space<vmem>>, vector<1x1x128xf32>,
    } else {
    }
    return
  }
  func.func @transform_0(%arg0: i32, %arg1: i32, %arg2: i32) -> (i32, i32) {
    %c0_i32 = arith.constant 0 : i32
    return %arg0, %arg2 : i32, i32
  }
  func.func @transform_1(%arg0: i32, %arg1: i32, %arg2: i32) -> (i32, i32) {
    %c0_i32 = arith.constant 0 : i32
    return %arg2, %arg1 : i32, i32
  }
  func.func @transform_2(%arg0: i32, %arg1: i32, %arg2: i32) -> (i32, i32) {
    %c0_i32 = arith.constant 0 : i32
    return %arg0, %arg1 : i32, i32
  }
  func.func @transform_3(%arg0: i32, %arg1: i32, %arg2: i32) -> (i32, i32, i32) {
    %c0_i32 = arith.constant 0 : i32
    %c0_i32_0 = arith.constant 0 : i32
    return %arg0, %c0_i32, %arg1 : i32, i32, i32
  }
  func.func @transform_4(%arg0: i32, %arg1: i32, %arg2: i32) -> (i32, i32, i32) {
    %c0_i32 = arith.constant 0 : i32
    %c0_i32_0 = arith.constant 0 : i32
    return %arg0, %c0_i32, %arg1 : i32, i32, i32
  }
}

</mosaic_0001>

<bundles_post_ra>
// kernel: tpu_custom_call.1
= control target key start
LH: loop header
LB: loop body
LE: loop exit
PB: predicated region body
PF: predicated region fallthrough
CT: control target
= control target key end

     0   :  { %10 = vsyncpa [#allocation4], 0  ;;  %vm129_vm0 = vcmask 293888   ;;  %vm154_vm1 = vcmask 1041408   ;;  %s711_s0 = inlined_call_operand.vmem [shape: bf16[128,36], index: 0, kind: input, shape index: {}]   ;;  %s712_s1 = inlined_call_operand.vmem [shape: bf16[36,128], index: 1, kind: input, shape index: {}]   ;;  %s713_s2 = inlined_call_operand.hbm [shape: f32[128,128], index: 2, kind: output, shape index: {0}]   ;;  %s714_s3 = inlined_call_operand.hbm [shape: f32[1,1,128], index: 3, kind: output, shape index: {1}]   ;;  %s715_s4 = inlined_call_operand.hbm [shape: f32[1,1,128], index: 4, kind: output, shape index: {2}]  }
   0x1   :  { %v490_v0 = vld [vmem:[%s712_s1] sm:$0xff]   ;;  %v491_v1 = vld [vmem:[%s712_s1 + $0x8] sm:$0xff]   ;;  %v492_v2 = vld [vmem:[%s712_s1 + $0x10] ss:$0 sps:$4 sm:$0x33]  }
   0x2   :  { %455 = vmatprep.subr.bf16.mxu0 %v490_v0  ;;  %v493_v3 = vld [vmem:[%s711_s0] sm:$0xff]   ;;  %477 = vmatprep.subr.bf16.mxu1 %v490_v0  ;;  %v156_v5 = vsel %vm154_vm1, %v492_v2, 0  ;;  %v494_v6 = vld [vmem:[%s711_s0 + $0x8] sm:$0xff]  }
   0x3   :  { %456 = vmatpush3.bf16.msra.mxu0 %v490_v0  ;;  %480 = vmatpush3.bf16.msra.mxu1 %v490_v0  ;;  %v497_v4 = vld [vmem:[%s711_s0 + $0x20] sm:$0xff]   ;;  %v498_v7 = vld [vmem:[%s711_s0 + $0x28] sm:$0xff]  }
   0x4   :  { %457 = vmatprep.subr.bf16.mxu0 %v491_v1  ;;  %461 = vmatprep.mubr.msk.bf16.mxu0 %vm129_vm0, %v493_v3 }
   0x5   :  { %478 = vmatprep.subr.bf16.mxu1 %v491_v1  ;;  %469 = vmatprep.mubr.msk.bf16.mxu1 %vm129_vm0, %v497_v4 }
   0x7   :  { %458 = vmatpush3.bf16.msra.mxu0 %v491_v1  ;;  %481 = vmatpush3.bf16.msra.mxu1 %v491_v1 }
   0x8   :  { %483 = vmatprep.subr.msk.bf16.mxu0 %vm154_vm1, %v492_v2  ;;  %484 = vmatprep.subr.msk.bf16.mxu1 %vm154_vm1, %v492_v2 }
   0x9   :  { %11 = vsyncpa [#allocation6], 0  ;;  %v495_v8 = vld [vmem:[%s711_s0 + $0x10] sm:$0xff]   ;;  %v496_v10 = vld [vmem:[%s711_s0 + $0x18] sm:$0xff]  }
   0xa   :  { %v499_v9 = vld [vmem:[%s711_s0 + $0x30] sm:$0xff]   ;;  %v500_v11 = vld [vmem:[%s711_s0 + $0x38] sm:$0xff]   ;;  %s571_s0 = smov [#allocation3]  }
   0xb   :  { %460 = vmatpush3.bf16.msra.mxu0 %v156_v5  ;;  %482 = vmatpush3.bf16.msra.mxu1 %v156_v5  ;;  %s387_s10 = sshll.u32 %s571_s0, 4  ;;  %s651_s10 = int_to_ptr.vmem [resolvable:$true] %s387_s10 }
   0xc   :  { %s501_s11 = scalar_lea.vmem %s651_s10, 2048  ;;  %p506_p1 = scmp.lt.s32.totalorder %s651_s10, %s651_s10 }
   0xd   :  { %p502_p0 = scmp.ne.s32.totalorder %s651_s10, %s501_s11  ;;  %p507_p2 = scmp.lt.s32.totalorder %s501_s11, %s501_s11 }
   0xe   :  { %462 = vmatmul.mubr.msk.bf16.vlgmr.msra.gmra.mrb[0].mxu0 %vm129_vm0, %v494_v6  ;;  %470 = vmatmul.mubr.msk.bf16.vlgmr.msra.gmra.mrb[0].mxu1 %vm129_vm0, %v498_v7 }
   0xf   :  { %465 = vmatprep.mubr.msk.bf16.mxu0 %vm129_vm0, %v495_v8  ;;  %473 = vmatprep.mubr.msk.bf16.mxu1 %vm129_vm0, %v499_v9  ;;  %p508_p3 = por %p507_p2, %p506_p1 }
  0x11   :  { %p509_p4 = pnand %p508_p3, %p502_p0 }
  0x16   :  { %466 = vmatmul.mubr.msk.bf16.gmra.mrb[4].mxu0 %vm129_vm0, %v496_v10  ;;  %474 = vmatmul.mubr.msk.bf16.gmra.mrb[4].mxu1 %vm129_vm0, %v500_v11 }
  0xe1   :  { %v463_v12 = vpop.f32.mrb[0].mxu0  ;;  %v642_v13 = vpop.f32.mrb[0].mxu1 }
  0xe2   :  { %308 = vst [vmem:[#allocation3 + $0x10] sm:$0xff] %v463_v12  ;;  %v192_v14 = vpop.f32.mrb[1].mxu0  ;;  %316 = vst [vmem:[#allocation3 + $0x50] sm:$0xff] %v642_v13  ;;  %v645_v15 = vpop.f32.mrb[1].mxu1  ;;  %v346_v23 = vmul.f32 %v463_v12, %v463_v12 }
  0xe3   :  { %306 = vst [vmem:[#allocation3] sm:$0xff] %v192_v14  ;;  %v464_v16 = vpop.f32.mrb[2].mxu0  ;;  %314 = vst [vmem:[#allocation3 + $0x40] sm:$0xff] %v645_v15  ;;  %v648_v17 = vpop.f32.mrb[2].mxu1  ;;  %v344_v20 = vmul.f32 %v192_v14, %v192_v14 }
  0xe4   :  { %309 = vst [vmem:[#allocation3 + $0x18] sm:$0xff] %v464_v16  ;;  %v195_v18 = vpop.f32.mrb[3].mxu0  ;;  %317 = vst [vmem:[#allocation3 + $0x58] sm:$0xff] %v648_v17  ;;  %v227_v19 = vpop.f32.mrb[3].mxu1  ;;  %v347_v26 = vmul.f32 %v464_v16, %v464_v16 }
  0xe5   :  { %307 = vst [vmem:[#allocation3 + $0x8] sm:$0xff] %v195_v18  ;;  %v322_v21 = vadd.f32 %v195_v18, %v192_v14  ;;  %v345_v22 = vmul.f32 %v195_v18, %v195_v18  ;;  %315 = vst [vmem:[#allocation3 + $0x48] sm:$0xff] %v227_v19 }
  0xe7   :  { %v323_v24 = vadd.f32 %v463_v12, %v322_v21  ;;  %v360_v25 = vadd.f32 %v345_v22, %v344_v20 }
  0xe9   :  { %v361_v27 = vadd.f32 %v360_v25, %v346_v23  ;;  %v467_v28 = vpop.f32.mrb[4].mxu0  ;;  %v324_v29 = vadd.f32 %v464_v16, %v323_v24  ;;  %v475_v30 = vpop.f32.mrb[4].mxu1 }
  0xea   :  { %312 = vst [vmem:[#allocation3 + $0x30] sm:$0xff] %v467_v28  ;;  %v208_v31 = vpop.f32.mrb[5].mxu0  ;;  %320 = vst [vmem:[#allocation3 + $0x70] sm:$0xff] %v475_v30  ;;  %v240_v32 = vpop.f32.mrb[5].mxu1 }
  0xeb   :  { %310 = vst [vmem:[#allocation3 + $0x20] sm:$0xff] %v208_v31  ;;  %v325_v33 = vadd.f32 %v324_v29, %v208_v31  ;;  %v348_v34 = vmul.f32 %v208_v31, %v208_v31  ;;  %v362_v35 = vadd.f32 %v361_v27, %v347_v26  ;;  %v468_v36 = vpop.f32.mrb[6].mxu0  ;;  %318 = vst [vmem:[#allocation3 + $0x60] sm:$0xff] %v240_v32  ;;  %v476_v37 = vpop.f32.mrb[6].mxu1 }
  0xec   :  { %313 = vst [vmem:[#allocation3 + $0x38] sm:$0xff] %v468_v36  ;;  %v211_v38 = vpop.f32.mrb[7].mxu0  ;;  %321 = vst [vmem:[#allocation3 + $0x78] sm:$0xff] %v476_v37  ;;  %v243_v39 = vpop.f32.mrb[7].mxu1 }
  0xed   :  { %v363_v40 = vadd.f32 %v362_v35, %v348_v34  ;;  %311 = vst [vmem:[#allocation3 + $0x28] sm:$0xff] %v211_v38  ;;  %v326_v41 = vadd.f32 %v325_v33, %v211_v38  ;;  %v349_v42 = vmul.f32 %v211_v38, %v211_v38  ;;  %319 = vst [vmem:[#allocation3 + $0x68] sm:$0xff] %v243_v39 }
  0xee   :  { %512 = shalt.err (!%p509_p4)
}
  0xef   :  { %s513_s14 = scalar_lea.hbm %s713_s2, 2048 }
  0xf0   :  { %p514_p5 = scmp.ne.s32.totalorder %s713_s2, %s513_s14  ;;  %p517_p6 = scmp.lt.u32.totalorder %s513_s14, %s713_s2 }
  0xf2   :  { %p519_p7 = pnand %p517_p6, %p514_p5 }
  0xf4   :  { %522 = shalt.err (!%p519_p7)
}
  0xf5   :  { %s572_s19 = smov 128   ;;  %s573_s20 = smov 8   ;;  %v350_v43 = vmul.f32 %v467_v28, %v467_v28  ;;  %v327_v44 = vadd.f32 %v467_v28, %v326_v41  ;;  %v364_v45 = vadd.f32 %v363_v40, %v349_v42  ;;  %v351_v46 = vmul.f32 %v468_v36, %v468_v36 }
  0xf6   :  { %393 = dma.vmem_to_hbm [thread:$0]  %s651_s10, 2048, %s713_s2, [#allocation4], %s572_s19, %s572_s19, %s573_s20   ;;  %v352_v49 = vmul.f32 %v645_v15, %v645_v15  ;;  %v353_v54 = vmul.f32 %v227_v19, %v227_v19  ;;  %v354_v55 = vmul.f32 %v642_v13, %v642_v13  ;;  %v355_v58 = vmul.f32 %v648_v17, %v648_v17 }
  0xf7   :  { %v365_v47 = vadd.f32 %v364_v45, %v350_v43  ;;  %v328_v48 = vadd.f32 %v468_v36, %v327_v44  ;;  %v356_v61 = vmul.f32 %v240_v32, %v240_v32  ;;  %v357_v2 = vmul.f32 %v243_v39, %v243_v39  ;;  %s574_s2 = smov [#allocation5]   ;;  %s575_s24 = smov [#allocation7]  }
  0xf8   :  { %v358_v3 = vmul.f32 %v475_v30, %v475_v30  ;;  %v359_v6 = vmul.f32 %v476_v37, %v476_v37  ;;  %s400_s23 = sshll.u32 %s574_s2, 4  ;;  %s410_s1 = sshll.u32 %s575_s24, 4  ;;  %s401_s23 = int_to_ptr.vmem [resolvable:$true] %s400_s23  ;;  %s679_s1 = int_to_ptr.vmem [resolvable:$true] %s410_s1 }
  0xf9   :  { %v329_v50 = vadd.f32 %v328_v48, %v645_v15  ;;  %v366_v51 = vadd.f32 %v365_v47, %v351_v46  ;;  %s523_s25 = scalar_lea.vmem %s401_s23, 16  ;;  %s527_s26 = scalar_lea.vmem %s401_s23, 32 }
  0xfa   :  { %p524_p8 = scmp.ne.s32.totalorder %s401_s23, %s523_s25  ;;  %p528_p9 = scmp.lt.s32.totalorder %s401_s23, %s401_s23 }
  0xfb   :  { %v367_v52 = vadd.f32 %v366_v51, %v352_v49  ;;  %v330_v53 = vadd.f32 %v329_v50, %v227_v19  ;;  %p529_p10 = scmp.lt.s32.totalorder %s527_s26, %s523_s25 }
  0xfd   :  { %v331_v56 = vadd.f32 %v642_v13, %v330_v53  ;;  %v368_v57 = vadd.f32 %v367_v52, %v353_v54  ;;  %p530_p11 = por %p529_p10, %p528_p9 }
  0xff   :  { %v369_v59 = vadd.f32 %v368_v57, %v354_v55  ;;  %v332_v60 = vadd.f32 %v648_v17, %v331_v56  ;;  %p531_p12 = pnand %p530_p11, %p524_p8 }
 0x101   :  { %v333_v62 = vadd.f32 %v332_v60, %v240_v32  ;;  %v370_v63 = vadd.f32 %v369_v59, %v355_v58 }
 0x103   :  { %v371_v0 = vadd.f32 %v370_v63, %v356_v61  ;;  %v334_v1 = vadd.f32 %v333_v62, %v243_v39 }
 0x105   :  { %v335_v4 = vadd.f32 %v475_v30, %v334_v1  ;;  %v372_v5 = vadd.f32 %v371_v0, %v357_v2 }
 0x107   :  { %v336_v7 = vadd.f32 %v476_v37, %v335_v4  ;;  %v373_v8 = vadd.f32 %v372_v5, %v358_v3 }
 0x109   :  { %v337_v9 = vrot.slane %v336_v7, 4  ;;  %v374_v10 = vadd.f32 %v373_v8, %v359_v6 }
 0x10b   :  { %v338_v11 = vadd.f32 %v337_v9, %v336_v7  ;;  %v375_v12 = vrot.slane %v374_v10, 4 }
 0x10d   :  { %v339_v13 = vrot.slane %v338_v11, 2  ;;  %v376_v14 = vadd.f32 %v375_v12, %v374_v10 }
 0x10f   :  { %v340_v15 = vadd.f32 %v339_v13, %v338_v11  ;;  %v377_v16 = vrot.slane %v376_v14, 2 }
 0x111   :  { %v341_v17 = vrot.slane %v340_v15, 1  ;;  %v378_v18 = vadd.f32 %v377_v16, %v376_v14 }
 0x113   :  { %v342_v19 = vadd.f32 %v341_v17, %v340_v15  ;;  %v379_v20 = vrot.slane %v378_v18, 1 }
 0x115   :  { %343 = vst [vmem:[#allocation5] sm:$0x1] %v342_v19  ;;  %v380_v21 = vadd.f32 %v379_v20, %v378_v18 }
 0x116   :  { %534 = shalt.err (!%p531_p12)
}
 0x117   :  { %s535_s29 = scalar_lea.hbm %s714_s3, 16 }
 0x118   :  { %p536_p13 = scmp.ne.s32.totalorder %s714_s3, %s535_s29  ;;  %p539_p0 = scmp.lt.u32.totalorder %s535_s29, %s714_s3 }
 0x11a   :  { %p541_p1 = pnand %p539_p0, %p536_p13 }
 0x11c   :  { %544 = shalt.err (!%p541_p1)
}
 0x11d   :  { %403 = dma.vmem_to_hbm [thread:$0]  %s401_s23, 16, %s714_s3, [#allocation6]   ;;  %381 = vst [vmem:[#allocation7] sm:$0x1] %v380_v21 }
 0x11e   :  { %s545_s0 = scalar_lea.vmem %s679_s1, 16  ;;  %s549_s10 = scalar_lea.vmem %s679_s1, 32 }
 0x11f   :  { %p546_p2 = scmp.ne.s32.totalorder %s679_s1, %s545_s0  ;;  %p550_p3 = scmp.lt.s32.totalorder %s679_s1, %s679_s1 }
 0x120   :  { %p551_p4 = scmp.lt.s32.totalorder %s549_s10, %s545_s0 }
 0x122   :  { %p552_p5 = por %p551_p4, %p550_p3 }
 0x124   :  { %p553_p6 = pnand %p552_p5, %p546_p2 }
 0x126   :  { %556 = shalt.err (!%p553_p6)
}
 0x127   :  { %s557_s13 = scalar_lea.hbm %s715_s4, 16 }
 0x128   :  { %p558_p7 = scmp.ne.s32.totalorder %s715_s4, %s557_s13  ;;  %p561_p8 = scmp.lt.u32.totalorder %s557_s13, %s715_s4 }
 0x12a   :  { %p563_p9 = pnand %p561_p8, %p558_p7 }
 0x12c   :  { %566 = shalt.err (!%p563_p9)
}
 0x12d   :  { %413 = dma.vmem_to_hbm [thread:$0]  %s679_s1, 16, %s715_s4, [#allocation6]  }
 0x12e   :  { %567 = dma.done.wait [#allocation4], 2048  }
 0x12f   :  { %568 = vsyncadd [#allocation4], 4294965248 }
 0x130   :  { %569 = dma.done.wait [#allocation6], 32  }
 0x131   :  { %570 = vsyncadd [#allocation6], 4294967264 }
 0x132   :  { %423 = vsyncpa [#allocation4], 1 }
 0x133   :  { %424 = vsyncpa [#allocation6], 1 }

</bundles_post_ra>
